<compile_context>
chip_gen: v6e
topology: v6e:2x2x1
jax: 0.10.0
libtpu: 0.0.40
codegen_flags: <defaults>
</compile_context>

<pallas_src>
import jax
import jax.numpy as jnp
from jax.experimental import pallas as pl
from jax.experimental.pallas import tpu as pltpu

LN_EPS = 1e-5


def _round_up(x, m):
    return ((x + m - 1) // m) * m


def clip_finetune_kernel(x_ref, w_pe_ref, b_pe_ref, w_head_ref, b_head_ref,
                         out_ref, acc_ref):
    """grid = (batch tiles [parallel], K tiles [arbitrary])."""
    k = pl.program_id(1)

    @pl.when(k == 0)
    def _():
        acc_ref[...] = jnp.zeros_like(acc_ref)

    # bf16 x bf16 -> f32 accumulation on the MXU.
    acc_ref[...] += jnp.dot(x_ref[...], w_pe_ref[...],
                            preferred_element_type=jnp.float32)

    @pl.when(k == pl.num_programs(1) - 1)
    def _():
        pooled = acc_ref[...] + b_pe_ref[...]                      # [tb, width] f32
        # One-pass LN stats: var = E[x^2] - mu^2 (saves one XLU reduction + a subtract).
        mu = jnp.mean(pooled, axis=-1, keepdims=True)
        var = jnp.mean(pooled * pooled, axis=-1, keepdims=True) - mu * mu
        normed = (pooled - mu) * jax.lax.rsqrt(var + LN_EPS)       # affine folded into head
        # fused (ln_g * proj * fc) head, lane-padded to 128 classes -> dense store.
        logits = jnp.dot(normed.astype(jnp.bfloat16), w_head_ref[...],
                         preferred_element_type=jnp.float32) + b_head_ref[...]
        out_ref[...] = logits.astype(out_ref.dtype)


def fuse_params(params, *, in_ch, patch, H, W, lane_pad=128):
    """One-time host-side weight fusion (not in the per-forward hot path)."""
    w_pe, b_pe, ln_g, ln_b, w_proj, w_fc, b_fc = params
    ph = pw = patch
    assert H % ph == 0 and W % pw == 0, "H/W must be divisible by patch size"
    gh, gw = H // ph, W // pw
    P = gh * gw
    width = w_pe.shape[1]
    num_classes = w_fc.shape[1]

    # Tile the patch-embed weight over the patch grid and fold in the 1/P of the
    # mean-pool, so   mean_p(patches @ w_pe) == x.reshape(B, C*H*W) @ w_pe_eff.
    w_pe4 = w_pe.reshape(in_ch, ph, pw, width)
    w_pe_eff = (jnp.tile(w_pe4, (1, gh, gw, 1)) / P).reshape(in_ch * H * W, width)
    b_pe2 = b_pe.reshape(1, width).astype(jnp.float32)

    # Fold layernorm affine + CLIP projection + fc into one [width, num_classes] matmul,
    # zero-padded to a 128-lane output so the kernel's store is unmasked.
    w_head = (ln_g.reshape(width, 1) * w_proj) @ w_fc
    b_head = ln_b.reshape(1, width) @ w_proj @ w_fc + b_fc.reshape(1, -1)
    nc_pad = _round_up(num_classes, lane_pad)
    w_head = jnp.pad(w_head, ((0, 0), (0, nc_pad - num_classes)))
    b_head = jnp.pad(b_head, ((0, 0), (0, nc_pad - num_classes)))

    return dict(
        w_pe=w_pe_eff.astype(jnp.bfloat16),    # bf16 MXU operand
        b_pe=b_pe2,                            # f32 (added post-accumulation)
        w_head=w_head.astype(jnp.bfloat16),    # bf16 MXU operand
        b_head=b_head.astype(jnp.float32),
        num_classes=num_classes,
    )


def _choose_tb(B):
    # Fill the MXU M dimension: up to 128 rows (good for v5e's 128x128 MXU and still
    # amortizes step overhead on v6e/v7x).  For mid-size B keep >=2 parallel grid
    # steps so v7x's second TensorCore gets work.  Always a multiple of 8.
    if B <= 8:
        return 8
    return min(_round_up(pl.cdiv(B, 2), 8), 128)


def _choose_tk(CHW):
    # K tile must be a multiple of 128 (lane dim of the x block) unless it spans all
    # of K; bounds the per-step w_pe / x VMEM blocks for large inputs.
    if CHW <= 4096:
        return CHW
    for tk in range(2048, 0, -128):
        if CHW % tk == 0:
            return tk
    return CHW  # fallback: single K block


def clip_finetune(x, fused):
    """x: [B, C, H, W] float32 (NCHW). Returns logits [B, num_classes] (f32)."""
    w_pe, b_pe = fused["w_pe"], fused["b_pe"]
    w_head, b_head = fused["w_head"], fused["b_head"]
    num_classes = fused["num_classes"]

    B, C, H, W = x.shape
    CHW = C * H * W
    assert w_pe.shape[0] == CHW, "fused params built for a different input shape"
    width = w_pe.shape[1]
    nc_pad = w_head.shape[1]

    tb = _choose_tb(B)
    tk = _choose_tk(CHW)
    B_pad = _round_up(B, tb)
    grid = (B_pad // tb, CHW // tk)

    # NCHW reshape to [B, C*H*W] is a free bitcast (contiguous); bf16 cast halves the
    # dominant HBM read traffic.  Zero-pad B to a full tile so every grid step runs a
    # full MXU M dimension (padded rows never NaN: eps in rsqrt, and they're sliced off).
    x_flat = x.reshape(B, CHW).astype(jnp.bfloat16)
    if B_pad != B:
        x_flat = jnp.pad(x_flat, ((0, B_pad - B), (0, 0)))

    out = pl.pallas_call(
        clip_finetune_kernel,
        out_shape=jax.ShapeDtypeStruct((B_pad, nc_pad), jnp.float32),
        grid_spec=pltpu.PrefetchScalarGridSpec(
            num_scalar_prefetch=0,
            grid=grid,
            in_specs=[
                pl.BlockSpec((tb, tk), lambda i, k: (i, k)),        # x tile
                pl.BlockSpec((tk, width), lambda i, k: (k, 0)),     # w_pe K-tile
                pl.BlockSpec((1, width), lambda i, k: (0, 0)),      # b_pe
                pl.BlockSpec((width, nc_pad), lambda i, k: (0, 0)),  # fused head
                pl.BlockSpec((1, nc_pad), lambda i, k: (0, 0)),     # fused head bias
            ],
            out_specs=pl.BlockSpec((tb, nc_pad), lambda i, k: (i, 0)),
            scratch_shapes=[pltpu.VMEM((tb, width), jnp.float32)],  # f32 K-accumulator
        ),
        compiler_params=pltpu.CompilerParams(
            dimension_semantics=("parallel", "arbitrary"),
            # Explicit budget with headroom (well under v7x's 64 MiB physical VMEM).
            vmem_limit_bytes=32 * 1024 * 1024,
        ),
    )(x_flat, w_pe, b_pe, w_head, b_head)

    return out[:B, :num_classes]


def init_params(key, *, in_ch=3, patch=8, width=32, output_dim=32, num_classes=8):
    Dp = in_ch * patch * patch
    ks = jax.random.split(key, 6)
    w_pe = jax.random.normal(ks[0], (Dp, width), jnp.float32) * (Dp ** -0.5)
    b_pe = jnp.zeros((1, 1, width), jnp.float32)
    ln_g = jnp.ones((1, width), jnp.float32)
    ln_b = jnp.zeros((1, width), jnp.float32)
    w_proj = jax.random.normal(ks[1], (width, output_dim), jnp.float32) * (width ** -0.5)
    # fc: nn.Linear(output_dim, num_classes); stored pre-transposed [output_dim, num_classes]
    w_fc = jax.random.normal(ks[2], (output_dim, num_classes), jnp.float32) * (output_dim ** -0.5)
    b_fc = jax.random.normal(ks[3], (1, num_classes), jnp.float32) * 0.01
    return (w_pe, b_pe, ln_g, ln_b, w_proj, w_fc, b_fc)


def reference(x, params, patch=8):
    """Unfused f32 reference matching the original (pre-optimization) computation."""
    w_pe, b_pe, ln_g, ln_b, w_proj, w_fc, b_fc = params
    B, C, H, W = x.shape
    ph = pw = patch
    P = (H // ph) * (W // pw)
    patches = x.reshape(B, C, H // ph, ph, W // pw, pw)
    patches = patches.transpose(0, 2, 4, 1, 3, 5).reshape(B, P, C * ph * pw)
    emb = jnp.einsum('bpd,dw->bpw', patches, w_pe) + b_pe
    pooled = jnp.mean(emb, axis=1)
    mu = jnp.mean(pooled, axis=-1, keepdims=True)
    var = jnp.mean((pooled - mu) ** 2, axis=-1, keepdims=True)
    ln = (pooled - mu) * jax.lax.rsqrt(var + LN_EPS) * ln_g + ln_b
    feat = ln @ w_proj
    return feat @ w_fc + b_fc


if __name__ == "__main__":
    key = jax.random.PRNGKey(0)
    kx, kp = jax.random.split(key)

    B, C, H, W = 2, 3, 16, 16
    patch = 8
    x = jax.random.normal(kx, (B, C, H, W), jnp.float32)
    params = init_params(kp, in_ch=C, patch=patch, width=32, output_dim=32, num_classes=8)

    fused = fuse_params(params, in_ch=C, patch=patch, H=H, W=W)
    out = jax.block_until_ready(clip_finetune(x, fused))

    ref = reference(x, params, patch=patch)
    assert out.shape == (B, 8), out.shape
    # bf16 MXU operands (f32 accumulation) -> looser tolerance than the all-f32 version.
    err = jnp.max(jnp.abs(out - ref))
    assert jnp.allclose(out, ref, atol=5e-2, rtol=5e-2), (err, out, ref)

    print("KERNEL_OK")
</pallas_src>

<mosaic_0001>
module attributes {stable_mosaic.version = 11 : i64} {
  func.func @clip_finetune_kernel(%arg0: i32, %arg1: i32, %arg2: memref<8x768xbf16, #tpu.memory_space<vmem>>, %arg3: memref<768x32xbf16, #tpu.memory_space<vmem>>, %arg4: memref<1x32xf32, #tpu.memory_space<vmem>>, %arg5: memref<32x128xbf16, #tpu.memory_space<vmem>>, %arg6: memref<1x128xf32, #tpu.memory_space<vmem>>, %arg7: memref<8x128xf32, #tpu.memory_space<vmem>>, %arg8: memref<8x32xf32, #tpu.memory_space<vmem>>) attributes {dimension_semantics = [#tpu.dimension_semantics<parallel>, #tpu.dimension_semantics<arbitrary>], iteration_bounds = array<i64: 1, 1>, scalar_prefetch = 0 : i64, scratch_operands = 1 : i64, tpu.core_type = #tpu.core_type<tc>, window_params = [{transform_indices = @transform_0, window_bounds = array<i64: 8, 768>}, {transform_indices = @transform_1, window_bounds = array<i64: 768, 32>}, {pipeline_mode = #tpu.pipeline_mode<synchronous>, transform_indices = @transform_2, window_bounds = array<i64: 1, 32>}, {pipeline_mode = #tpu.pipeline_mode<synchronous>, transform_indices = @transform_3, window_bounds = array<i64: 32, 128>}, {pipeline_mode = #tpu.pipeline_mode<synchronous>, transform_indices = @transform_4, window_bounds = array<i64: 1, 128>}, {transform_indices = @transform_5, window_bounds = array<i64: 8, 128>}]} {
    %c0_i32 = arith.constant 0 : i32
    %0 = arith.cmpi eq, %arg1, %c0_i32 : i32
    %1 = arith.extui %0 : i1 to i32
    %c0_i32_0 = arith.constant 0 : i32
    %2 = arith.cmpi ne, %1, %c0_i32_0 : i32
    scf.if %2 {
      %cst_10 = arith.constant 0.000000e+00 : f32
      %12 = vector.broadcast %cst_10 : f32 to vector<8x32xf32>
      %c0_11 = arith.constant 0 : index
      %c0_12 = arith.constant 0 : index
      %13 = vector.load %arg8[%c0_11, %c0_12] : memref<8x32xf32, #tpu.memory_space<vmem>>, vector<8x32xf32>
      tpu.vector_store %arg8[%c0_11, %c0_12], %12 {strides = array<i32>} : memref<8x32xf32, #tpu.memory_space<vmem>>, vector<8x32xf32>,
    } else {
    }
    %c0 = arith.constant 0 : index
    %c0_1 = arith.constant 0 : index
    %3 = vector.load %arg8[%c0, %c0_1] : memref<8x32xf32, #tpu.memory_space<vmem>>, vector<8x32xf32>
    %c0_2 = arith.constant 0 : index
    %c0_3 = arith.constant 0 : index
    %4 = vector.load %arg2[%c0_2, %c0_3] : memref<8x768xbf16, #tpu.memory_space<vmem>>, vector<8x768xbf16>
    %c0_4 = arith.constant 0 : index
    %c0_5 = arith.constant 0 : index
    %5 = vector.load %arg3[%c0_4, %c0_5] : memref<768x32xbf16, #tpu.memory_space<vmem>>, vector<768x32xbf16>
    %cst = arith.constant dense<0.000000e+00> : vector<8x32xf32>
    %6 = tpu.matmul %4, %5, %cst {dimension_numbers = #tpu.dot_dimension_numbers<[1], [0], [0], [1], [0, 0, 1, 1], [], []>} : vector<8x768xbf16>, vector<768x32xbf16>, vector<8x32xf32> -> vector<8x32xf32>
    %7 = arith.addf %3, %6 : vector<8x32xf32>
    %c0_6 = arith.constant 0 : index
    %c0_7 = arith.constant 0 : index
    %8 = vector.load %arg8[%c0_6, %c0_7] : memref<8x32xf32, #tpu.memory_space<vmem>>, vector<8x32xf32>
    tpu.vector_store %arg8[%c0_6, %c0_7], %7 {strides = array<i32>} : memref<8x32xf32, #tpu.memory_space<vmem>>, vector<8x32xf32>,
    %c0_i32_8 = arith.constant 0 : i32
    %9 = arith.cmpi eq, %arg1, %c0_i32_8 : i32
    %10 = arith.extui %9 : i1 to i32
    %c0_i32_9 = arith.constant 0 : i32
    %11 = arith.cmpi ne, %10, %c0_i32_9 : i32
    scf.if %11 {
      %c0_10 = arith.constant 0 : index
      %c0_11 = arith.constant 0 : index
      %12 = vector.load %arg8[%c0_10, %c0_11] : memref<8x32xf32, #tpu.memory_space<vmem>>, vector<8x32xf32>
      %c0_12 = arith.constant 0 : index
      %c0_13 = arith.constant 0 : index
      %13 = vector.load %arg4[%c0_12, %c0_13] : memref<1x32xf32, #tpu.memory_space<vmem>>, vector<1x32xf32>
      %14 = vector.broadcast %13 : vector<1x32xf32> to vector<8x32xf32>
      %15 = arith.addf %12, %14 : vector<8x32xf32>
      %cst_14 = arith.constant dense<0.000000e+00> : vector<8xf32>
      %16 = vector.multi_reduction <add>, %15, %cst_14 [1] : vector<8x32xf32> to vector<8xf32>
      %17 = vector.shape_cast %16 : vector<8xf32> to vector<8x1xf32>
      %cst_15 = arith.constant 3.200000e+01 : f32
      %18 = vector.broadcast %cst_15 : f32 to vector<8x1xf32>
      %19 = arith.divf %17, %18 : vector<8x1xf32>
      %20 = arith.mulf %15, %15 : vector<8x32xf32>
      %cst_16 = arith.constant dense<0.000000e+00> : vector<8xf32>
      %21 = vector.multi_reduction <add>, %20, %cst_16 [1] : vector<8x32xf32> to vector<8xf32>
      %22 = vector.shape_cast %21 : vector<8xf32> to vector<8x1xf32>
      %cst_17 = arith.constant 3.200000e+01 : f32
      %23 = vector.broadcast %cst_17 : f32 to vector<8x1xf32>
      %24 = arith.divf %22, %23 : vector<8x1xf32>
      %25 = arith.mulf %19, %19 : vector<8x1xf32>
      %26 = arith.subf %24, %25 : vector<8x1xf32>
      %27 = vector.broadcast %19 : vector<8x1xf32> to vector<8x32xf32>
      %28 = arith.subf %15, %27 : vector<8x32xf32>
      %cst_18 = arith.constant 9.99999974E-6 : f32
      %29 = vector.broadcast %cst_18 : f32 to vector<8x1xf32>
      %30 = arith.addf %26, %29 : vector<8x1xf32>
      %31 = math.rsqrt %30 : vector<8x1xf32>
      %32 = vector.broadcast %31 : vector<8x1xf32> to vector<8x32xf32>
      %33 = arith.mulf %28, %32 : vector<8x32xf32>
      %34 = arith.truncf %33 : vector<8x32xf32> to vector<8x32xbf16>
      %c0_19 = arith.constant 0 : index
      %c0_20 = arith.constant 0 : index
      %35 = vector.load %arg5[%c0_19, %c0_20] : memref<32x128xbf16, #tpu.memory_space<vmem>>, vector<32x128xbf16>
      %cst_21 = arith.constant dense<0.000000e+00> : vector<8x128xf32>
      %36 = tpu.matmul %34, %35, %cst_21 {dimension_numbers = #tpu.dot_dimension_numbers<[1], [0], [0], [1], [0, 0, 1, 1], [], []>} : vector<8x32xbf16>, vector<32x128xbf16>, vector<8x128xf32> -> vector<8x128xf32>
      %c0_22 = arith.constant 0 : index
      %c0_23 = arith.constant 0 : index
      %37 = vector.load %arg6[%c0_22, %c0_23] : memref<1x128xf32, #tpu.memory_space<vmem>>, vector<1x128xf32>
      %38 = vector.broadcast %37 : vector<1x128xf32> to vector<8x128xf32>
      %39 = arith.addf %36, %38 : vector<8x128xf32>
      %c0_24 = arith.constant 0 : index
      %c0_25 = arith.constant 0 : index
      %40 = vector.load %arg7[%c0_24, %c0_25] : memref<8x128xf32, #tpu.memory_space<vmem>>, vector<8x128xf32>
      tpu.vector_store %arg7[%c0_24, %c0_25], %39 {strides = array<i32>} : memref<8x128xf32, #tpu.memory_space<vmem>>, vector<8x128xf32>,
    } else {
    }
    return
  }
  func.func @transform_0(%arg0: i32, %arg1: i32) -> (i32, i32) {
    %c0_i32 = arith.constant 0 : i32
    return %arg0, %arg1 : i32, i32
  }
  func.func @transform_1(%arg0: i32, %arg1: i32) -> (i32, i32) {
    %c0_i32 = arith.constant 0 : i32
    %c0_i32_0 = arith.constant 0 : i32
    return %arg1, %c0_i32 : i32, i32
  }
  func.func @transform_2(%arg0: i32, %arg1: i32) -> (i32, i32) {
    %c0_i32 = arith.constant 0 : i32
    %c0_i32_0 = arith.constant 0 : i32
    %c0_i32_1 = arith.constant 0 : i32
    return %c0_i32, %c0_i32_0 : i32, i32
  }
  func.func @transform_3(%arg0: i32, %arg1: i32) -> (i32, i32) {
    %c0_i32 = arith.constant 0 : i32
    %c0_i32_0 = arith.constant 0 : i32
    %c0_i32_1 = arith.constant 0 : i32
    return %c0_i32, %c0_i32_0 : i32, i32
  }
  func.func @transform_4(%arg0: i32, %arg1: i32) -> (i32, i32) {
    %c0_i32 = arith.constant 0 : i32
    %c0_i32_0 = arith.constant 0 : i32
    %c0_i32_1 = arith.constant 0 : i32
    return %c0_i32, %c0_i32_0 : i32, i32
  }
  func.func @transform_5(%arg0: i32, %arg1: i32) -> (i32, i32) {
    %c0_i32 = arith.constant 0 : i32
    %c0_i32_0 = arith.constant 0 : i32
    return %arg0, %c0_i32 : i32, i32
  }
}

</mosaic_0001>

<bundles_post_ra>
// kernel: tpu_custom_call.1
= control target key start
LH: loop header
LB: loop body
LE: loop exit
PB: predicated region body
PF: predicated region fallthrough
CT: control target
= control target key end

     0   :  { %s1095_s0 = inlined_call_operand.vmem [shape: bf16[8,768], index: 0, kind: input, shape index: {}]   ;;  %s1096_s1 = inlined_call_operand.vmem [shape: bf16[768,32], index: 1, kind: input, shape index: {}]   ;;  %s1097_s2 = inlined_call_operand.vmem [shape: f32[1,32], index: 2, kind: input, shape index: {}]   ;;  %s1098_s3 = inlined_call_operand.vmem [shape: bf16[32,128], index: 3, kind: input, shape index: {}]   ;;  %s1099_s4 = inlined_call_operand.vmem [shape: f32[1,128], index: 4, kind: input, shape index: {}]   ;;  %s1100_s5 = inlined_call_operand.hbm [shape: f32[8,128], index: 5, kind: output, shape index: {}]  }
   0x1   :  { %v809_v0 = vld [vmem:[%s1096_s1 + $0x78] sm:$0xff]   ;;  %v813_v4 = vld [vmem:[%s1096_s1 + $0x70] sm:$0xff]   ;;  %v817_v8 = vld [vmem:[%s1096_s1 + $0x68] sm:$0xff]  }
   0x2   :  { %v810_v1 = vld [vmem:[%s1096_s1 + $0xf8] sm:$0xff]   ;;  %729 = vmatprep.subr.bf16.mxu0 %v809_v0  ;;  %v814_v5 = vld [vmem:[%s1096_s1 + $0xf0] sm:$0xff]   ;;  %v818_v9 = vld [vmem:[%s1096_s1 + $0xe8] sm:$0xff]  }
   0x3   :  { %v811_v2 = vld [vmem:[%s1096_s1 + $0x38] sm:$0xff]   ;;  %751 = vmatprep.subr.bf16.mxu1 %v810_v1  ;;  %v815_v6 = vld [vmem:[%s1096_s1 + $0x30] sm:$0xff]   ;;  %v819_v10 = vld [vmem:[%s1096_s1 + $0x28] sm:$0xff]  }
   0x4   :  { %v812_v3 = vld [vmem:[%s1096_s1 + $0xb8] sm:$0xff]   ;;  %730 = vmatpush3.bf16.msra.mxu0 %v811_v2  ;;  %v816_v7 = vld [vmem:[%s1096_s1 + $0xb0] sm:$0xff]   ;;  %v820_v11 = vld [vmem:[%s1096_s1 + $0xa8] sm:$0xff]  }
   0x5   :  { %752 = vmatpush3.bf16.msra.mxu1 %v812_v3  ;;  %731 = vmatprep.subr.bf16.mxu0 %v813_v4  ;;  %v821_v12 = vld [vmem:[%s1096_s1 + $0x60] sm:$0xff]   ;;  %v825_v16 = vld [vmem:[%s1096_s1 + $0x58] sm:$0xff]   ;;  %v829_v20 = vld [vmem:[%s1096_s1 + $0x50] sm:$0xff]  }
   0x6   :  { %753 = vmatprep.subr.bf16.mxu1 %v814_v5  ;;  %v822_v13 = vld [vmem:[%s1096_s1 + $0xe0] sm:$0xff]   ;;  %v826_v17 = vld [vmem:[%s1096_s1 + $0xd8] sm:$0xff]   ;;  %v830_v21 = vld [vmem:[%s1096_s1 + $0xd0] sm:$0xff]  }
   0x7   :  { %v823_v14 = vld [vmem:[%s1096_s1 + $0x20] sm:$0xff]   ;;  %v827_v18 = vld [vmem:[%s1096_s1 + $0x18] sm:$0xff]   ;;  %v831_v22 = vld [vmem:[%s1096_s1 + $0x10] sm:$0xff]  }
   0x8   :  { %732 = vmatpush3.bf16.msra.mxu0 %v815_v6  ;;  %v824_v15 = vld [vmem:[%s1096_s1 + $0xa0] sm:$0xff]   ;;  %v828_v19 = vld [vmem:[%s1096_s1 + $0x98] sm:$0xff]   ;;  %v832_v23 = vld [vmem:[%s1096_s1 + $0x90] sm:$0xff]  }
   0x9   :  { %754 = vmatpush3.bf16.msra.mxu1 %v816_v7  ;;  %733 = vmatprep.subr.bf16.mxu0 %v817_v8  ;;  %v833_v24 = vld [vmem:[%s1096_s1 + $0x48] sm:$0xff]   ;;  %v837_v28 = vld [vmem:[%s1096_s1 + $0x40] sm:$0xff]   ;;  %v845_v38 = vld [vmem:[%s1096_s1 + $0x178] sm:$0xff]  }
   0xa   :  { %755 = vmatprep.subr.bf16.mxu1 %v818_v9  ;;  %v834_v25 = vld [vmem:[%s1096_s1 + $0xc8] sm:$0xff]   ;;  %v838_v29 = vld [vmem:[%s1096_s1 + $0xc0] sm:$0xff]   ;;  %v846_v39 = vld [vmem:[%s1096_s1 + $0x138] sm:$0xff]  }
   0xb   :  { %v835_v26 = vld [vmem:[%s1096_s1 + $0x8] sm:$0xff]   ;;  %v839_v30 = vld [vmem:[%s1096_s1] sm:$0xff]   ;;  %v847_v40 = vld [vmem:[%s1096_s1 + $0x170] sm:$0xff]  }
   0xc   :  { %734 = vmatpush3.bf16.msra.mxu0 %v819_v10  ;;  %v836_v27 = vld [vmem:[%s1096_s1 + $0x88] sm:$0xff]   ;;  %v840_v31 = vld [vmem:[%s1096_s1 + $0x80] sm:$0xff]   ;;  %v848_v41 = vld [vmem:[%s1096_s1 + $0x130] sm:$0xff]  }
   0xd   :  { %756 = vmatpush3.bf16.msra.mxu1 %v820_v11  ;;  %735 = vmatprep.subr.bf16.mxu0 %v821_v12  ;;  %v29_v32 = vld [vmem:[%s1095_s0] sm:$0xff]  ;;  %v30_v33 = vld [vmem:[%s1095_s0 + $0x8] sm:$0xff]  ;;  %v853_v46 = vld [vmem:[%s1096_s1 + $0x158] sm:$0xff]  }
   0xe   :  { %757 = vmatprep.subr.bf16.mxu1 %v822_v13  ;;  %v670_v34 = vcombine.low %v29_v32, %v29_v32  ;;  %v671_v35 = vcombine.high %v29_v32, %v29_v32  ;;  %v672_v36 = vcombine.low %v30_v33, %v30_v33  ;;  %v673_v37 = vcombine.high %v30_v33, %v30_v33  ;;  %v849_v42 = vld [vmem:[%s1096_s1 + $0x168] sm:$0xff]   ;;  %v851_v44 = vld [vmem:[%s1096_s1 + $0x160] sm:$0xff]   ;;  %v31_v47 = vld [vmem:[%s1095_s0 + $0x10] sm:$0xff] }
   0xf   :  { %v850_v43 = vld [vmem:[%s1096_s1 + $0x128] sm:$0xff]   ;;  %v852_v45 = vld [vmem:[%s1096_s1 + $0x120] sm:$0xff]   ;;  %v675_v48 = vcombine.high %v31_v47, %v31_v47  ;;  %v854_v49 = vld [vmem:[%s1096_s1 + $0x118] sm:$0xff]  }
  0x10   :  { %736 = vmatpush3.bf16.msra.mxu0 %v823_v14  ;;  %469 = vmatprep.mubr.bf16.mxu0 %v671_v35 }
  0x11   :  { %758 = vmatpush3.bf16.msra.mxu1 %v824_v15  ;;  %737 = vmatprep.subr.bf16.mxu0 %v825_v16 }
  0x12   :  { %759 = vmatprep.subr.bf16.mxu1 %v826_v17  ;;  %509 = vmatprep.mubr.bf16.mxu1 %v673_v37 }
  0x14   :  { %738 = vmatpush3.bf16.msra.mxu0 %v827_v18 }
  0x15   :  { %760 = vmatpush3.bf16.msra.mxu1 %v828_v19  ;;  %739 = vmatprep.subr.bf16.mxu0 %v829_v20 }
  0x16   :  { %761 = vmatprep.subr.bf16.mxu1 %v830_v21 }
  0x18   :  { %740 = vmatpush3.bf16.msra.mxu0 %v831_v22 }
  0x19   :  { %762 = vmatpush3.bf16.msra.mxu1 %v832_v23  ;;  %741 = vmatprep.subr.bf16.mxu0 %v833_v24 }
  0x1a   :  { %763 = vmatprep.subr.bf16.mxu1 %v834_v25 }
  0x1c   :  { %742 = vmatpush3.bf16.msra.mxu0 %v835_v26 }
  0x1d   :  { %764 = vmatpush3.bf16.msra.mxu1 %v836_v27  ;;  %743 = vmatprep.subr.bf16.mxu0 %v837_v28 }
  0x1e   :  { %765 = vmatprep.subr.bf16.mxu1 %v838_v29 }
  0x20   :  { %744 = vmatpush3.bf16.msra.mxu0 %v839_v30 }
  0x21   :  { %766 = vmatpush3.bf16.msra.mxu1 %v840_v31  ;;  %773 = vmatprep.subr.bf16.mxu0 %v845_v38 }
  0x23   :  { %470 = vmatmul.mubr.bf16.vlgmr.msra.gmra.mxu0 %v670_v34 }
  0x24   :  { %510 = vmatmul.mubr.bf16.vlgmr.msra.gmra.mxu1 %v672_v36  ;;  %774 = vmatpush3.bf16.msra.mxu0 %v846_v39 }
  0x25   :  { %775 = vmatprep.subr.bf16.mxu0 %v847_v40 }
  0x28   :  { %776 = vmatpush3.bf16.msra.mxu0 %v848_v41 }
  0x29   :  { %777 = vmatprep.subr.bf16.mxu0 %v849_v42 }
  0x2c   :  { %778 = vmatpush3.bf16.msra.mxu0 %v850_v43 }
  0x2d   :  { %779 = vmatprep.subr.bf16.mxu0 %v851_v44 }
  0x30   :  { %780 = vmatpush3.bf16.msra.mxu0 %v852_v45 }
  0x31   :  { %10 = vsyncpa [#allocation4], 0  ;;  %781 = vmatprep.subr.bf16.mxu0 %v853_v46  ;;  %v855_v50 = vld [vmem:[%s1096_s1 + $0x150] sm:$0xff]   ;;  %549 = vmatprep.mubr.bf16.mxu0 %v675_v48  ;;  %v857_v52 = vld [vmem:[%s1096_s1 + $0x148] sm:$0xff]   ;;  %v674_v56 = vcombine.low %v31_v47, %v31_v47  ;;  %vm26_vm0 = vcmask 261120   ;;  %v889_v57 = vmov 0.0  }
  0x32   :  { %v856_v51 = vld [vmem:[%s1096_s1 + $0x110] sm:$0xff]   ;;  %v858_v53 = vld [vmem:[%s1096_s1 + $0x108] sm:$0xff]   ;;  %v859_v54 = vld [vmem:[%s1096_s1 + $0x140] sm:$0xff]   ;;  %27 = vst.msk [vmem:[#allocation2] sm:$0xff] %vm26_vm0, %v889_v57  ;;  %798 = vmatprep.subr.bf16.mxu1 %v889_v57  ;;  %vm890_vm1 = vmmov 0  }
  0x33   :  { %v860_v55 = vld [vmem:[%s1096_s1 + $0x100] sm:$0xff]   ;;  %v863_v19 = vld [vmem:[%s1098_s3 + $0x8] sm:$0xff]   ;;  %802 = vmatprep.mubr.msk.bf16.mxu1 %vm890_vm1, %v889_v57 }
  0x34   :  { %782 = vmatpush3.bf16.msra.mxu0 %v854_v49  ;;  %v724_v13 = vld [vmem:[%s1097_s2] ss:$0 sm:$0xff]  ;;  %799 = vmatpush3.bf16.msra.mxu1 %v863_v19 }
  0x35   :  { %783 = vmatprep.subr.bf16.mxu0 %v855_v50  ;;  %v864_v20 = vld [vmem:[%s1098_s3] sm:$0xff]   ;;  %800 = vmatprep.subr.bf16.mxu1 %v889_v57  ;;  %s891_s3 = smov [#allocation3]  }
  0x36   :  { %v725_v32 = vld [vmem:[%s1099_s4] ss:$0 sm:$0xff]  ;;  %s662_s25 = sshll.u32 %s891_s3, 4  ;;  %s663_s25 = int_to_ptr.vmem [resolvable:$true] %s662_s25 }
  0x37   :  { %s867_s26 = scalar_lea.vmem %s663_s25, 128  ;;  %p872_p1 = scmp.lt.s32.totalorder %s663_s25, %s663_s25 }
  0x38   :  { %784 = vmatpush3.bf16.msra.mxu0 %v856_v51  ;;  %801 = vmatpush3.bf16.msra.mxu1 %v864_v20  ;;  %p868_p0 = scmp.ne.s32.totalorder %s663_s25, %s867_s26  ;;  %p873_p2 = scmp.lt.s32.totalorder %s867_s26, %s867_s26 }
  0x39   :  { %785 = vmatprep.subr.bf16.mxu0 %v857_v52  ;;  %v28_v8 = vld [vmem:[#allocation2] sm:$0xff] }
  0x3a   :  { %p874_p3 = por %p873_p2, %p872_p1 }
  0x3c   :  { %786 = vmatpush3.bf16.msra.mxu0 %v858_v53  ;;  %p875_p4 = pnand %p874_p3, %p868_p0 }
  0x3d   :  { %787 = vmatprep.subr.bf16.mxu0 %v859_v54 }
  0x40   :  { %788 = vmatpush3.bf16.msra.mxu0 %v860_v55 }
  0x43   :  { %550 = vmatmul.mubr.bf16.vlgmr.msra.gmra.mxu0 %v674_v56 }
  0xe3   :  { %v745_v58 = vpop.f32.mrf.mxu0 }
  0xe4   :  { %v767_v59 = vpop.f32.mrf.mxu1 }
  0xe5   :  { %v746_v60 = vpop.f32.mrf.mxu0 }
  0xe6   :  { %v768_v61 = vpop.f32.mrf.mxu1  ;;  %v747_v2 = vadd.f32 %v746_v60, %v745_v58 }
  0xe7   :  { %v748_v62 = vpop.f32.mrf.mxu0  ;;  %v769_v3 = vadd.f32 %v768_v61, %v767_v59 }
  0xe8   :  { %v770_v63 = vpop.f32.mrf.mxu1 }
  0xe9   :  { %v749_v0 = vpop.f32.mrf.mxu0  ;;  %v512_v6 = vadd.f32 %v769_v3, %v747_v2 }
  0xea   :  { %v771_v1 = vpop.f32.mrf.mxu1 }
 0x103   :  { %v789_v4 = vpop.f32.mrf.mxu0 }
 0x105   :  { %v790_v5 = vpop.f32.mrf.mxu0 }
 0x106   :  { %v791_v7 = vadd.f32 %v790_v5, %v789_v4 }
 0x107   :  { %v792_v9 = vpop.f32.mrf.mxu0 }
 0x108   :  { %v552_v10 = vadd.f32 %v791_v7, %v512_v6 }
 0x109   :  { %v793_v11 = vpop.f32.mrf.mxu0 }
 0x10a   :  { %v557_v12 = vadd.f32 %v552_v10, %v28_v8 }
 0x10c   :  { %559 = vst.msk [vmem:[#allocation2] sm:$0xff] %vm26_vm0, %v557_v12 }
 0x113   :  { %v563_v14 = vld [vmem:[#allocation2] sm:$0xff] }
 0x114   :  { %v571_v15 = vadd.f32 %v724_v13, %v563_v14 }
 0x116   :  { %v572_v16 = vsel %vm26_vm0, %v571_v15, 0.0  ;;  %v577_v17 = vmul.f32 %v571_v15, %v571_v15 }
 0x117   :  { %573 = vadd.xlane.f32.xlu0 %v572_v16 }
 0x118   :  { %v578_v18 = vsel %vm26_vm0, %v577_v17, 0.0 }
 0x11b   :  { %579 = vadd.xlane.f32.xlu0 %v578_v18 }
 0x1a0   :  { %v574_v21 = vpop.xlane.xlu0 %573 }
 0x1a1   :  { %v576_v22 = vmul.f32 0.03125, %v574_v21 }
 0x1a3   :  { %v582_v24 = vmul.f32 %v576_v22, %v576_v22  ;;  %v584_v28 = vsub.f32 %v571_v15, %v576_v22 }
 0x1a4   :  { %v580_v23 = vpop.xlane.xlu0 %579 }
 0x1a5   :  { %v581_v25 = vmul.f32 0.03125, %v580_v23 }
 0x1a7   :  { %v583_v26 = vsub.f32 %v581_v25, %v582_v24 }
 0x1a9   :  { %v585_v27 = vadd.f32 1e-05, %v583_v26 }
 0x1ab   :  { %865 = vrsqrt.f32 %v585_v27 }
 0x1b8   :  { %v866_v29 = vpop.eup %865 }
 0x1b9   :  { %v587_v30 = vmul.f32 %v866_v29, %v584_v28 }
 0x1bb   :  { %v588_v31 = vpack.c.bf16 %v587_v30, %v587_v30 }
 0x1bd   :  { %803 = vmatmul.mubr.msk.bf16.vlgmr.msra.gmra.mxu1 %vm26_vm0, %v588_v31 }
 0x27d   :  { %v649_v33 = vpop.f32.mrf.mxu1 }
 0x27e   :  { %v650_v34 = vadd.f32 %v725_v32, %v649_v33 }
 0x27f   :  { %v804_v35 = vpop.f32.mrf.mxu1 }
 0x280   :  { %655 = vst [vmem:[#allocation3] sm:$0xff] %v650_v34 }
 0x281   :  { %v652_v36 = vpop.f32.mrf.mxu1 }
 0x282   :  { %878 = shalt.err (!%p875_p4)
}
 0x283   :  { %665 = dma.vmem_to_hbm [thread:$0]  %s663_s25, 128, %s1100_s5, [#allocation4]   ;;  %v805_v37 = vpop.f32.mrf.mxu1 }
 0x284   :  { %887 = dma.done.wait [#allocation4], 128  }
 0x285   :  { %888 = vsyncadd [#allocation4], 4294967168 }
 0x286   :  { %669 = vsyncpa [#allocation4], 1 }

</bundles_post_ra>
